<compile_context>
chip_gen: v6e
topology: v6e:2x2x1
jax: 0.10.0
libtpu: 0.0.40
codegen_flags: <defaults>
</compile_context>

<pallas_src>
import functools

import jax
import jax.numpy as jnp
from jax.experimental import pallas as pl
from jax.experimental.pallas import tpu as pltpu


# ---------------------------------------------------------------------------
# Shared helpers
# ---------------------------------------------------------------------------

def _make_tap_masks(H, W):
    """(9, H*W) f32 {0,1} validity mask per conv tap t = (dh+1)*3 + (dw+1)."""
    HW = H * W
    pos = jnp.arange(HW, dtype=jnp.int32)
    h_idx = pos // W
    w_idx = pos % W
    masks = []
    for dh in (-1, 0, 1):
        for dw in (-1, 0, 1):
            m = ((h_idx + dh >= 0) & (h_idx + dh < H)
                 & (w_idx + dw >= 0) & (w_idx + dw < W))
            masks.append(m)
    return jnp.stack(masks, axis=0).astype(jnp.float32)


def _pack_weights_grouped(w_oihw):
    """(Cout, Cin, 3, 3) -> (3, Cout, 3*Cin): group-major (group = kh), columns
    within a group ordered kw-major then Cin (matches the im2col built below)."""
    Cout, Cin, KH, KW = w_oihw.shape
    return jnp.transpose(w_oihw, (2, 0, 3, 1)).reshape(KH, Cout, KW * Cin)


def _conv3x3_taps(x, w_ref, mask_ref, *, H, W, use_bf16):
    """3x3/s1/p1 conv of x:(Cin, H*W) f32 with w_ref:(3, Cout, 3*Cin) -> (Cout, H*W) f32.

    Per-dh grouped accumulation: only 3*Cin shifted rows are live at a time and
    the next group's rolls/masks overlap the current group's MXU matmul."""
    HW = H * W
    op_dtype = jnp.bfloat16 if use_bf16 else jnp.float32
    acc = None
    for gi, dh in enumerate((-1, 0, 1)):
        cols = []
        for dwi, dw in enumerate((-1, 0, 1)):
            s = dh * W + dw
            shifted = x if s == 0 else pltpu.roll(x, (-s) % HW, axis=1)
            if dh == 0 and dw == 0:
                masked = shifted                          # center tap: all-valid
            else:
                t = gi * 3 + dwi
                masked = shifted * mask_ref[t:t + 1, :]   # zero the wrapped halo lanes
            cols.append(masked)
        col_g = jnp.concatenate(cols, axis=0).astype(op_dtype)      # (3*Cin, HW)
        part = jnp.dot(w_ref[gi].astype(op_dtype), col_g,
                       preferred_element_type=jnp.float32)           # (Cout, HW) f32
        acc = part if acc is None else acc + part
    return acc


def _compiler_params(dimension_semantics, vmem_bytes_estimate):
    kwargs = dict(dimension_semantics=dimension_semantics)
    # Raise the scoped-VMEM cap only when the working set actually needs it,
    # staying under the smallest physical budget (64 MiB on v7x).
    if vmem_bytes_estimate > 12 * 1024 * 1024:
        kwargs["vmem_limit_bytes"] = int(min(vmem_bytes_estimate, 48 * 1024 * 1024))
    return pltpu.CompilerParams(**kwargs)


# ---------------------------------------------------------------------------
# Standalone ConvReLU layer (mirrors the PyTorch ConvReLU sub-module)
# ---------------------------------------------------------------------------

def _conv3x3_kernel(mask_ref, x_ref, w_ref, o_ref, *, H, W, apply_relu, use_bf16):
    acc = _conv3x3_taps(x_ref[...].astype(jnp.float32), w_ref, mask_ref,
                        H=H, W=W, use_bf16=use_bf16)
    if apply_relu:
        acc = jnp.maximum(acc, 0.0)
    o_ref[...] = acc.astype(o_ref.dtype)


def conv3x3(x_nchw, w_oihw, *, relu=True, use_bf16=False):
    """3x3 / stride-1 / pad-1 / bias-free conv (+ optional ReLU). NCHW in/out."""
    N, C, H, W = x_nchw.shape
    Cout, Cin, KH, KW = w_oihw.shape
    assert (Cin, KH, KW) == (C, 3, 3)
    HW = H * W

    x_flat = x_nchw.reshape(N, C, HW)          # free view: channels on sublanes,
    masks = _make_tap_masks(H, W)              # flat spatial (lane-dense) on lanes
    w_grp = _pack_weights_grouped(w_oihw)      # (3, Cout, 3*Cin), repacked once
    if use_bf16:
        w_grp = w_grp.astype(jnp.bfloat16)

    itm = jnp.dtype(w_grp.dtype).itemsize
    vmem_est = (2 * w_grp.size * itm                    # double-buffered weights
                + 2 * (C + Cout) * HW * 4               # in/out blocks (x2 buffers)
                + 2 * 9 * HW * 4                        # masks
                + 5 * max(C, Cout) * HW * 4)            # im2col group + acc temps

    kernel = functools.partial(_conv3x3_kernel, H=H, W=W,
                               apply_relu=relu, use_bf16=use_bf16)
    out_flat = pl.pallas_call(
        kernel,
        out_shape=jax.ShapeDtypeStruct((N, Cout, HW), x_nchw.dtype),
        grid_spec=pltpu.PrefetchScalarGridSpec(
            num_scalar_prefetch=0,
            grid=(N,),
            in_specs=[
                pl.BlockSpec((9, HW), lambda b: (0, 0)),                 # resident masks
                pl.BlockSpec((None, C, HW), lambda b: (b, 0, 0)),
                pl.BlockSpec((3, Cout, 3 * Cin), lambda b: (0, 0, 0)),   # resident weights
            ],
            out_specs=pl.BlockSpec((None, Cout, HW), lambda b: (b, 0, 0)),
        ),
        compiler_params=_compiler_params(("parallel",), vmem_est),
    )(masks, x_flat, w_grp)
    return out_flat.reshape(N, Cout, H, W)


# ---------------------------------------------------------------------------
# Fused VDSR forward: one pallas_call over all 20 layers
# ---------------------------------------------------------------------------

def _vdsr_fused_kernel(mask_ref, x_ref, w_ref, o_ref, act_ref, *,
                       H, W, n_layers, use_bf16):
    l = pl.program_id(1)

    @pl.when(l == 0)
    def _():
        # Load the 1-channel input into channel 0 of the resident activation;
        # the remaining channels stay zero so the zero-padded layer-0 weight
        # columns contribute nothing.
        act_ref[...] = jnp.zeros_like(act_ref)
        act_ref[0:1, :] = x_ref[...].astype(jnp.float32)

    acc = _conv3x3_taps(act_ref[...], w_ref, mask_ref,
                        H=H, W=W, use_bf16=use_bf16)

    @pl.when(l < n_layers - 1)
    def _():
        # conv1 and the 18 trunk layers carry a ReLU; the activation never
        # leaves VMEM between layers.
        act_ref[...] = jnp.maximum(acc, 0.0)

    @pl.when(l == n_layers - 1)
    def _():
        # Final 64->1 conv (only accumulator row 0 is real because the last
        # layer's output rows are zero-padded) + residual identity, no ReLU.
        o_ref[...] = (acc[0:1, :] + x_ref[...].astype(jnp.float32)).astype(o_ref.dtype)


def vdsr_forward(x, w_first, w_trunk, w_last, *, use_bf16=True):
    """VDSR: conv1(1->64)+ReLU, 18x ConvReLU(64), conv2(64->1), + identity."""
    N, Cin0, H, W = x.shape
    assert Cin0 == 1
    CH = int(w_first.shape[0])
    L = int(w_trunk.shape[0]) + 2
    HW = H * W

    # Zero-pad the degenerate first (Cin 1->CH) and last (Cout 1->CH) layers to
    # the trunk slab shape so one stacked (L, 3, CH, 3*CH) weight tensor feeds
    # every grid step; repacked once, group-major (group = kh).
    w0 = jnp.pad(w_first, ((0, 0), (0, CH - Cin0), (0, 0), (0, 0)))
    wL = jnp.pad(w_last, ((0, CH - w_last.shape[0]), (0, 0), (0, 0), (0, 0)))
    w_all = jnp.concatenate([w0[None], w_trunk, wL[None]], axis=0)   # (L, CH, CH, 3, 3)
    w_all = jnp.transpose(w_all, (0, 3, 1, 4, 2)).reshape(L, 3, CH, 3 * CH)
    if use_bf16:
        w_all = w_all.astype(jnp.bfloat16)       # halves the per-layer weight DMA too

    masks = _make_tap_masks(H, W)
    x_flat = x.reshape(N, Cin0, HW)

    itm = jnp.dtype(w_all.dtype).itemsize
    vmem_est = (2 * 3 * CH * 3 * CH * itm        # double-buffered per-layer weight block
                + CH * HW * 4                    # resident activation scratch
                + 5 * CH * HW * 4                # im2col group + f32 accumulator temps
                + 4 * HW * 4                     # x / out blocks
                + 2 * 9 * HW * 4)                # masks
    # TODO(synk): for production image sizes, tile H into row-tiles with a
    # 1-row halo (tile-aware masks) and add a parallel spatial grid axis so
    # v7x's two TensorCores are both fed; at these shapes one block per image
    # fits comfortably in VMEM on every generation.

    kernel = functools.partial(_vdsr_fused_kernel, H=H, W=W, n_layers=L,
                               use_bf16=use_bf16)
    out_flat = pl.pallas_call(
        kernel,
        out_shape=jax.ShapeDtypeStruct((N, 1, HW), x.dtype),
        grid_spec=pltpu.PrefetchScalarGridSpec(
            num_scalar_prefetch=0,
            grid=(N, L),                          # batch parallel, layers sequential
            in_specs=[
                pl.BlockSpec((9, HW), lambda b, l: (0, 0)),                      # masks
                pl.BlockSpec((None, 1, HW), lambda b, l: (b, 0, 0)),             # input / identity
                pl.BlockSpec((None, 3, CH, 3 * CH), lambda b, l: (l, 0, 0, 0)),  # layer weights
            ],
            out_specs=pl.BlockSpec((None, 1, HW), lambda b, l: (b, 0, 0)),
            scratch_shapes=[pltpu.VMEM((CH, HW), jnp.float32)],                  # resident activation
        ),
        compiler_params=_compiler_params(("parallel", "arbitrary"), vmem_est),
    )(masks, x_flat, w_all)
    return out_flat.reshape(N, 1, H, W)


# ---------------------------------------------------------------------------
# Reference + self-test
# ---------------------------------------------------------------------------

def _conv_ref(x, w, relu):
    out = jax.lax.conv_general_dilated(
        x, w, window_strides=(1, 1), padding=((1, 1), (1, 1)),
        dimension_numbers=("NCHW", "OIHW", "NCHW"),
        precision=jax.lax.Precision.HIGHEST)
    return jnp.maximum(out, 0.0) if relu else out


if __name__ == "__main__":
    key = jax.random.PRNGKey(0)
    k_x, k_w, k_vx, k_w1, k_wt, k_w2 = jax.random.split(key, 6)

    # --- ConvReLU(channels=4) single layer, NCHW like PyTorch ---
    N, C, H, W = 2, 4, 16, 16
    x = jax.random.normal(k_x, (N, C, H, W), dtype=jnp.float32)
    fan_in = C * 3 * 3
    bound = 1.0 / float(fan_in) ** 0.5
    w = jax.random.uniform(k_w, (C, C, 3, 3), dtype=jnp.float32,
                           minval=-bound, maxval=bound)

    out = jax.block_until_ready(conv3x3(x, w, relu=True, use_bf16=False))
    ref = _conv_ref(x, w, relu=True)
    assert out.shape == (N, C, H, W)
    assert jnp.allclose(out, ref, atol=2e-3, rtol=2e-3), (
        f"ConvReLU mismatch, max abs err {float(jnp.max(jnp.abs(out - ref)))}")

    # --- full VDSR (1 -> 64 -> ... -> 64 -> 1, residual add), fused kernel ---
    CH, LAYERS = 64, 18
    xv = jax.random.normal(k_vx, (1, 1, H, W), dtype=jnp.float32)
    std_t = float(2.0 / (3 * 3 * CH)) ** 0.5     # PyTorch init: sqrt(2/(k*k*Cout))
    std_o = float(2.0 / (3 * 3 * 1)) ** 0.5
    w_first = std_t * jax.random.normal(k_w1, (CH, 1, 3, 3), dtype=jnp.float32)
    w_trunk = std_t * jax.random.normal(k_wt, (LAYERS, CH, CH, 3, 3), dtype=jnp.float32)
    w_last = std_o * jax.random.normal(k_w2, (1, CH, 3, 3), dtype=jnp.float32)

    ref_v = _conv_ref(xv, w_first, relu=True)
    for i in range(LAYERS):
        ref_v = _conv_ref(ref_v, w_trunk[i], relu=True)
    ref_v = _conv_ref(ref_v, w_last, relu=False) + xv

    vdsr = jax.jit(functools.partial(vdsr_forward, use_bf16=True))
    out_v = jax.block_until_ready(vdsr(xv, w_first, w_trunk, w_last))
    assert out_v.shape == xv.shape
    rel = float(jnp.linalg.norm((out_v - ref_v).ravel())
                / jnp.linalg.norm(ref_v.ravel()))
    assert rel < 8e-2, f"VDSR (bf16 MXU) relative L2 error too large: {rel}"

    print("KERNEL_OK")
</pallas_src>

<mosaic_0001>
module attributes {stable_mosaic.version = 11 : i64} {
  func.func @_conv3x3_kernel(%arg0: i32, %arg1: memref<9x256xf32, #tpu.memory_space<vmem>>, %arg2: memref<1x4x256xf32, #tpu.memory_space<vmem>>, %arg3: memref<3x4x12xf32, #tpu.memory_space<vmem>>, %arg4: memref<1x4x256xf32, #tpu.memory_space<vmem>>) attributes {dimension_semantics = [#tpu.dimension_semantics<parallel>], iteration_bounds = array<i64: 2>, scalar_prefetch = 0 : i64, scratch_operands = 0 : i64, tpu.core_type = #tpu.core_type<tc>, window_params = [{pipeline_mode = #tpu.pipeline_mode<synchronous>, transform_indices = @transform_0, window_bounds = array<i64: 9, 256>}, {transform_indices = @transform_1, window_bounds = array<i64: 1, 4, 256>}, {pipeline_mode = #tpu.pipeline_mode<synchronous>, transform_indices = @transform_2, window_bounds = array<i64: 3, 4, 12>}, {transform_indices = @transform_3, window_bounds = array<i64: 1, 4, 256>}]} {
    %c0 = arith.constant 0 : index
    %c0_0 = arith.constant 0 : index
    %c0_1 = arith.constant 0 : index
    %0 = vector.load %arg2[%c0, %c0_0, %c0_1] : memref<1x4x256xf32, #tpu.memory_space<vmem>>, vector<1x4x256xf32>
    %1 = vector.shape_cast %0 : vector<1x4x256xf32> to vector<4x256xf32>
    %c17_i32 = arith.constant 17 : i32
    %2 = tpu.dynamic_rotate %1 by %c17_i32 dim 1 : vector<4x256xf32>, i32 -> vector<4x256xf32>
    %c0_2 = arith.constant 0 : index
    %c0_3 = arith.constant 0 : index
    %3 = vector.load %arg1[%c0_2, %c0_3] : memref<9x256xf32, #tpu.memory_space<vmem>>, vector<1x256xf32>
    %4 = vector.broadcast %3 : vector<1x256xf32> to vector<4x256xf32>
    %5 = arith.mulf %2, %4 : vector<4x256xf32>
    %c16_i32 = arith.constant 16 : i32
    %6 = tpu.dynamic_rotate %1 by %c16_i32 dim 1 : vector<4x256xf32>, i32 -> vector<4x256xf32>
    %c1 = arith.constant 1 : index
    %c0_4 = arith.constant 0 : index
    %7 = vector.load %arg1[%c1, %c0_4] : memref<9x256xf32, #tpu.memory_space<vmem>>, vector<1x256xf32>
    %8 = vector.broadcast %7 : vector<1x256xf32> to vector<4x256xf32>
    %9 = arith.mulf %6, %8 : vector<4x256xf32>
    %c15_i32 = arith.constant 15 : i32
    %10 = tpu.dynamic_rotate %1 by %c15_i32 dim 1 : vector<4x256xf32>, i32 -> vector<4x256xf32>
    %c2 = arith.constant 2 : index
    %c0_5 = arith.constant 0 : index
    %11 = vector.load %arg1[%c2, %c0_5] : memref<9x256xf32, #tpu.memory_space<vmem>>, vector<1x256xf32>
    %12 = vector.broadcast %11 : vector<1x256xf32> to vector<4x256xf32>
    %13 = arith.mulf %10, %12 : vector<4x256xf32>
    %14 = tpu.concatenate %5, %9, %13 in 0 : vector<4x256xf32>, vector<4x256xf32>, vector<4x256xf32> -> vector<12x256xf32>
    %c0_6 = arith.constant 0 : index
    %c0_7 = arith.constant 0 : index
    %c0_8 = arith.constant 0 : index
    %15 = vector.load %arg3[%c0_6, %c0_7, %c0_8] : memref<3x4x12xf32, #tpu.memory_space<vmem>>, vector<1x4x12xf32>
    %16 = vector.shape_cast %15 : vector<1x4x12xf32> to vector<4x12xf32>
    %cst = arith.constant dense<0.000000e+00> : vector<4x256xf32>
    %17 = tpu.matmul %16, %14, %cst {dimension_numbers = #tpu.dot_dimension_numbers<[1], [0], [0], [1], [0, 0, 1, 1], [], []>} : vector<4x12xf32>, vector<12x256xf32>, vector<4x256xf32> -> vector<4x256xf32>
    %c1_i32 = arith.constant 1 : i32
    %18 = tpu.dynamic_rotate %1 by %c1_i32 dim 1 : vector<4x256xf32>, i32 -> vector<4x256xf32>
    %c3 = arith.constant 3 : index
    %c0_9 = arith.constant 0 : index
    %19 = vector.load %arg1[%c3, %c0_9] : memref<9x256xf32, #tpu.memory_space<vmem>>, vector<1x256xf32>
    %20 = vector.broadcast %19 : vector<1x256xf32> to vector<4x256xf32>
    %21 = arith.mulf %18, %20 : vector<4x256xf32>
    %c255_i32 = arith.constant 255 : i32
    %22 = tpu.dynamic_rotate %1 by %c255_i32 dim 1 : vector<4x256xf32>, i32 -> vector<4x256xf32>
    %c5 = arith.constant 5 : index
    %c0_10 = arith.constant 0 : index
    %23 = vector.load %arg1[%c5, %c0_10] : memref<9x256xf32, #tpu.memory_space<vmem>>, vector<1x256xf32>
    %24 = vector.broadcast %23 : vector<1x256xf32> to vector<4x256xf32>
    %25 = arith.mulf %22, %24 : vector<4x256xf32>
    %26 = tpu.concatenate %21, %1, %25 in 0 : vector<4x256xf32>, vector<4x256xf32>, vector<4x256xf32> -> vector<12x256xf32>
    %c1_11 = arith.constant 1 : index
    %c0_12 = arith.constant 0 : index
    %c0_13 = arith.constant 0 : index
    %27 = vector.load %arg3[%c1_11, %c0_12, %c0_13] : memref<3x4x12xf32, #tpu.memory_space<vmem>>, vector<1x4x12xf32>
    %28 = vector.shape_cast %27 : vector<1x4x12xf32> to vector<4x12xf32>
    %cst_14 = arith.constant dense<0.000000e+00> : vector<4x256xf32>
    %29 = tpu.matmul %28, %26, %cst_14 {dimension_numbers = #tpu.dot_dimension_numbers<[1], [0], [0], [1], [0, 0, 1, 1], [], []>} : vector<4x12xf32>, vector<12x256xf32>, vector<4x256xf32> -> vector<4x256xf32>
    %30 = arith.addf %17, %29 : vector<4x256xf32>
    %c241_i32 = arith.constant 241 : i32
    %31 = tpu.dynamic_rotate %1 by %c241_i32 dim 1 : vector<4x256xf32>, i32 -> vector<4x256xf32>
    %c6 = arith.constant 6 : index
    %c0_15 = arith.constant 0 : index
    %32 = vector.load %arg1[%c6, %c0_15] : memref<9x256xf32, #tpu.memory_space<vmem>>, vector<1x256xf32>
    %33 = vector.broadcast %32 : vector<1x256xf32> to vector<4x256xf32>
    %34 = arith.mulf %31, %33 : vector<4x256xf32>
    %c240_i32 = arith.constant 240 : i32
    %35 = tpu.dynamic_rotate %1 by %c240_i32 dim 1 : vector<4x256xf32>, i32 -> vector<4x256xf32>
    %c7 = arith.constant 7 : index
    %c0_16 = arith.constant 0 : index
    %36 = vector.load %arg1[%c7, %c0_16] : memref<9x256xf32, #tpu.memory_space<vmem>>, vector<1x256xf32>
    %37 = vector.broadcast %36 : vector<1x256xf32> to vector<4x256xf32>
    %38 = arith.mulf %35, %37 : vector<4x256xf32>
    %c239_i32 = arith.constant 239 : i32
    %39 = tpu.dynamic_rotate %1 by %c239_i32 dim 1 : vector<4x256xf32>, i32 -> vector<4x256xf32>
    %c8 = arith.constant 8 : index
    %c0_17 = arith.constant 0 : index
    %40 = vector.load %arg1[%c8, %c0_17] : memref<9x256xf32, #tpu.memory_space<vmem>>, vector<1x256xf32>
    %41 = vector.broadcast %40 : vector<1x256xf32> to vector<4x256xf32>
    %42 = arith.mulf %39, %41 : vector<4x256xf32>
    %43 = tpu.concatenate %34, %38, %42 in 0 : vector<4x256xf32>, vector<4x256xf32>, vector<4x256xf32> -> vector<12x256xf32>
    %c2_18 = arith.constant 2 : index
    %c0_19 = arith.constant 0 : index
    %c0_20 = arith.constant 0 : index
    %44 = vector.load %arg3[%c2_18, %c0_19, %c0_20] : memref<3x4x12xf32, #tpu.memory_space<vmem>>, vector<1x4x12xf32>
    %45 = vector.shape_cast %44 : vector<1x4x12xf32> to vector<4x12xf32>
    %cst_21 = arith.constant dense<0.000000e+00> : vector<4x256xf32>
    %46 = tpu.matmul %45, %43, %cst_21 {dimension_numbers = #tpu.dot_dimension_numbers<[1], [0], [0], [1], [0, 0, 1, 1], [], []>} : vector<4x12xf32>, vector<12x256xf32>, vector<4x256xf32> -> vector<4x256xf32>
    %47 = arith.addf %30, %46 : vector<4x256xf32>
    %cst_22 = arith.constant 0.000000e+00 : f32
    %48 = vector.broadcast %cst_22 : f32 to vector<4x256xf32>
    %49 = arith.maximumf %47, %48 : vector<4x256xf32>
    %c0_23 = arith.constant 0 : index
    %c0_24 = arith.constant 0 : index
    %c0_25 = arith.constant 0 : index
    %50 = vector.load %arg4[%c0_23, %c0_24, %c0_25] : memref<1x4x256xf32, #tpu.memory_space<vmem>>, vector<1x4x256xf32>
    %51 = vector.shape_cast %50 : vector<1x4x256xf32> to vector<4x256xf32>
    %52 = vector.shape_cast %49 : vector<4x256xf32> to vector<1x4x256xf32>
    tpu.vector_store %arg4[%c0_23, %c0_24, %c0_25], %52 {strides = array<i32>} : memref<1x4x256xf32, #tpu.memory_space<vmem>>, vector<1x4x256xf32>,
    return
  }
  func.func @transform_0(%arg0: i32) -> (i32, i32) {
    %c0_i32 = arith.constant 0 : i32
    %c0_i32_0 = arith.constant 0 : i32
    %c0_i32_1 = arith.constant 0 : i32
    return %c0_i32, %c0_i32_0 : i32, i32
  }
  func.func @transform_1(%arg0: i32) -> (i32, i32, i32) {
    %c0_i32 = arith.constant 0 : i32
    %c0_i32_0 = arith.constant 0 : i32
    %c0_i32_1 = arith.constant 0 : i32
    return %arg0, %c0_i32, %c0_i32_0 : i32, i32, i32
  }
  func.func @transform_2(%arg0: i32) -> (i32, i32, i32) {
    %c0_i32 = arith.constant 0 : i32
    %c0_i32_0 = arith.constant 0 : i32
    %c0_i32_1 = arith.constant 0 : i32
    %c0_i32_2 = arith.constant 0 : i32
    return %c0_i32, %c0_i32_0, %c0_i32_1 : i32, i32, i32
  }
  func.func @transform_3(%arg0: i32) -> (i32, i32, i32) {
    %c0_i32 = arith.constant 0 : i32
    %c0_i32_0 = arith.constant 0 : i32
    %c0_i32_1 = arith.constant 0 : i32
    return %arg0, %c0_i32, %c0_i32_0 : i32, i32, i32
  }
}

</mosaic_0001>

<bundles_post_ra>
// kernel: tpu_custom_call.1
= control target key start
LH: loop header
LB: loop body
LE: loop exit
PB: predicated region body
PF: predicated region fallthrough
CT: control target
= control target key end

     0   :  { %8 = vsyncpa [#allocation3], 0  ;;  %s1338_s0 = inlined_call_operand.hbm [shape: f32[9,256], index: 0, kind: input, shape index: {}]   ;;  %s1339_s1 = inlined_call_operand.hbm [shape: f32[2,4,256], index: 1, kind: input, shape index: {}]   ;;  %s1340_s2 = inlined_call_operand.hbm [shape: f32[3,4,12], index: 2, kind: input, shape index: {}]   ;;  %s1341_s3 = inlined_call_operand.hbm [shape: f32[2,4,256], index: 3, kind: output, shape index: {}]  }
   0x1   :  { %9 = vsyncpa [#allocation6], 0 }
   0x2   :  { %11 = vsyncpa [#allocation6 + $0x1], 0 }
   0x3   :  { %12 = vsyncpa [#allocation4], 0 }
   0x4   :  { %14 = vsyncpa [#allocation4 + $0x1], 0  ;;  %s1081_s12 = smov 0   ;;  %s1083_s13 = smov 0  }
   0x5   :  { %s1085_s14 = smov 0   ;;  %s1087_s15 = smov 0  }
   0x6 LB: > { %s1102_s16 = sadd.s32 4294967295, %s1042_s15   ;;  %s779_s17 = sadd.s32 4294967294, %s1042_s15   ;;  %s1042_s15 = sphi %s1087_s15, %s1365_s15   ;;  %s1038_s14 = sphi %s1085_s14, %s1364_s14   ;;  %s1034_s13 = sphi %s1083_s13, %s1363_s13   ;;  %s1030_s12 = sphi %s1081_s12, %s1362_s12  }
   0x7   : > { %p61_p0 = scmp.ne.s32.totalorder %s1034_s13, %s1030_s12  ;;  %p1342_p1 = scmp.eq.s32.totalorder %s1102_s16, 0 }
   0x8   : > { %p112_p3 = scmp.eq.s32.totalorder %s779_s17, 1  ;;  %p780_p5 = scmp.ge.s32.totalorder %s1042_s15, 1 }
   0x9   : > { %p1111_p4 = por %p1342_p1, %p61_p0  ;;  %p119_p7 = scmp.lt.s32.totalorder %s1042_s15, 3 }
   0xa   : > { %p1116_p6 = por %p112_p3, %p61_p0  ;;  %s1044_s21 = smov [#allocation7]  }
   0xb   : > { %s1346_s18 = scalar_select %p1111_p4, 1, 0 }
   0xc   : > { %s1347_s19 = scalar_select %p1116_p6, 1, 0 }
   0xd   : > { %p1121_p8 = pnand %p780_p5, %p119_p7  ;;  %s144_s22 = sshll.u32 %s1044_s21, 4  ;;  %s145_s22 = int_to_ptr.vmem [resolvable:$true] %s144_s22 }
   0xe   : > { %s1045_s24 = smov [#allocation2]   ;;  %s901_s26 = scalar_lea.vmem %s145_s22, 192 }
   0xf   : > { %s1348_s20 = scalar_select %p1121_p8, 1, 0 }
  0x10   : > { %p820_p9 = pneg %p1121_p8  ;;  %s131_s25 = sshll.u32 %s1045_s24, 4  ;;  %s132_s25 = int_to_ptr.vmem [resolvable:$true] %s131_s25 }
  0x11   : > { %p902_p13 = scmp.ne.s32.totalorder %s145_s22, %s901_s26  ;;  %p909_p5 = scmp.lt.s32.totalorder %s145_s22, %s145_s22 }
  0x12   : > { %p1130_p11 = pnand %p820_p9, %p1342_p1  ;;  %p910_p7 = scmp.lt.s32.totalorder %s901_s26, %s901_s26 }
  0x14   : > { %p892_p12 = pneg %p1130_p11  ;;  %p911_p10 = por %p910_p7, %p909_p5 }
  0x16   : > { %p904_p0 = pnand %p902_p13, %p892_p12 }
  0x18   : > { %p905_p3 = pneg %p904_p0 }
  0x1a   : > { %p912_p9 = pnand %p911_p10, %p905_p3 }
  0x1c   : > { %915 = shalt.err (!%p912_p9)
}
  0x1d   : > { %s1046_s27 = smov 64   ;;  %s1047_s28 = smov 4  }
  0x1e   : > { %826 = dma.hbm_to_vmem [thread:$0]  (!%p1130_p11), %s1340_s2, 192, %s145_s22, [#allocation6], %s1046_s27, %s1046_s27, %s1047_s28  }
  0x1f   : > { %s927_s4 = scalar_lea.vmem %s132_s25, 512  ;;  %p935_p2 = scmp.lt.s32.totalorder %s132_s25, %s132_s25 }
  0x20   : > { %p928_p1 = scmp.ne.s32.totalorder %s132_s25, %s927_s4  ;;  %p936_p6 = scmp.lt.s32.totalorder %s927_s4, %s927_s4 }
  0x22   : > { %p930_p13 = pnand %p928_p1, %p892_p12  ;;  %p937_p5 = por %p936_p6, %p935_p2 }
  0x24   : > { %p931_p0 = pneg %p930_p13 }
  0x26   : > { %p938_p10 = pnand %p937_p5, %p931_p0 }
  0x28   : > { %941 = shalt.err (!%p938_p10)
}
  0x29   : > { %s1048_s5 = smov 256   ;;  %s1049_s6 = smov 16  }
  0x2a   : > { %823 = dma.hbm_to_vmem [thread:$0]  (!%p1130_p11), %s1338_s0, 512, %s132_s25, [#allocation3], %s1048_s5, %s1048_s5, %s1049_s6  }
  0x2b   : > { %s1153_s9 = sadd.s32 1, %s1042_s15   ;;  %s48_s11 = sadd.s32 1, %s1038_s14 }
  0x2c   : > { %s45_s10 = ssub.s32 %s1042_s15, %s1153_s9  ;;  %p55_p2 = scmp.ne.s32.totalorder %s1038_s14, %s1034_s13 }
  0x2d   : > { %p46_p1 = scmp.eq.s32.totalorder %s45_s10, 0  ;;  %p56_p6 = scmp.eq.s32.totalorder %s1042_s15, 0 }
  0x2e   : > { %p1350_p3 = scmp.eq.s32.totalorder %s1102_s16, 1  ;;  %p837_p9 = scmp.lt.s32.totalorder %s1042_s15, 2 }
  0x2f   : > { %s1162_s17 = scalar_select %p46_p1, %s1038_s14, %s48_s11  }
  0x30   : > { %p57_p12 = por %p56_p6, %p55_p2  ;;  %p1166_p7 = por %p1350_p3, %p55_p2 }
  0x31   : > { %s158_s22 = sand.u32 1, %s1042_s15   ;;  %s160_s23 = sand.u32 1, %s1038_s14  }
  0x32   : > { %s1351_s21 = scalar_select %p1166_p7, 1, 0 }
  0x33   : > { %s784_s24 = sshll.u32 %s160_s23, 3  ;;  %s806_s25 = sshll.u32 %s1042_s15, 7 }
  0x34   : > { %s1177_s28 = scalar_lea.hbm %s1339_s1, %s806_s25  ;;  %s162_s29 = scalar_lea.vmem [#allocation5], %s784_s24 }
  0x35   : > { %s170_s30 = sshll.u32 %s162_s29, 4  ;;  %p1179_p11 = pnand %p837_p9, %p57_p12  ;;  %s171_s30 = int_to_ptr.vmem [resolvable:$true] %s170_s30 }
  0x36   : > { %s159_s5 = scalar_lea.sflag [#allocation6], %s158_s22  ;;  %s942_s6 = scalar_lea.hbm %s1177_s28, 128 }
  0x37   : > { %p943_p13 = scmp.ne.s32.totalorder %s1177_s28, %s942_s6  ;;  %p944_p0 = pneg %p1179_p11 }
  0x38   : > { %s947_s10 = scalar_lea.hbm %s1339_s1, 256  ;;  %p948_p1 = scmp.lt.s32.totalorder %s1177_s28, %s1339_s1 }
  0x39   : > { %p945_p5 = pnand %p944_p0, %p943_p13  ;;  %p949_p2 = scmp.lt.s32.totalorder %s947_s10, %s942_s6 }
  0x3b   : > { %p946_p10 = pneg %p945_p5  ;;  %p950_p6 = por %p949_p2, %p948_p1 }
  0x3d   : > { %p951_p12 = pnand %p950_p6, %p946_p10 }
  0x3f   : > { %954 = shalt.err (!%p951_p12)
}
  0x40   : > { %s955_s24 = scalar_lea.vmem %s171_s30, 128  ;;  %s1050_s22 = smov [#allocation5]  }
  0x41   : > { %p956_p3 = scmp.ne.s32.totalorder %s171_s30, %s955_s24  ;;  %s960_s25 = sshll.u32 %s1050_s22, 4  ;;  %s961_s25 = int_to_ptr.vmem [resolvable:$false] %s960_s25 }
  0x42   : > { %s962_s26 = scalar_lea.vmem %s961_s25, 256  ;;  %p963_p13 = scmp.lt.s32.totalorder %s171_s30, %s961_s25 }
  0x43   : > { %p958_p9 = pnand %p956_p3, %p944_p0  ;;  %p964_p5 = scmp.lt.s32.totalorder %s962_s26, %s955_s24 }
  0x45   : > { %p959_p7 = pneg %p958_p9  ;;  %p965_p4 = por %p964_p5, %p963_p13 }
  0x47   : > { %p966_p8 = pnand %p965_p4, %p959_p7 }
  0x49   : > { %969 = shalt.err (!%p966_p8)
}
  0x4a   : > { %830 = dma.hbm_to_vmem [thread:$0]  (!%p1179_p11), %s1177_s28, 128, %s171_s30, %s159_s5  }
  0x4b   : > { %p1353_p10 = scmp.ne.s32.totalorder %s1348_s20, 0 }
  0x4c   : > { %p1354_p1 = scmp.eq.s32.totalorder (!%p1353_p10), %s1102_s16, 0 }
  0x4d   : > { %179 = sbr.rel (%p1353_p10) target bundleno = 455 (0x1c7), region = 32 }
  0x52   : > { %1013 = dma.done.wait (%p1354_p1), [#allocation3], 512   ;;  %p1355_p0 = pmov %p1354_p1 }
  0x53   : > { %s185_s27 = sand.u32 1, %s1102_s16   ;;  %s187_s29 = sand.u32 1, %s1034_s13  }
  0x54   : > { %1015 = vsyncadd (%p1355_p0), [#allocation3], 4294966784  ;;  %s1207_s6 = sshll.u32 %s187_s29, 3  ;;  %s186_s28 = scalar_lea.sflag [#allocation6], %s185_s27 }
  0x55   : > { %s189_s30 = scalar_lea.vmem [#allocation5], %s1207_s6  ;;  %p1356_p4 = scmp.ne.s32.totalorder %s1346_s18, 0 }
  0x57   : > { %1017 = dma.done.wait (%p1356_p4), %s186_s28, 128  }
  0x58   : > { %1019 = vsyncadd (%p1356_p4), %s186_s28, 4294967168  ;;  %p1357_p8 = pmov %p1355_p0 }
  0x59   : > { %p1358_p7 = pmov %p1355_p0 }
  0x5a   : > { %1021 = dma.done.wait (%p1357_p8), [#allocation6], 192  }
  0x5b   : > { %1023 = vsyncadd (%p1358_p7), [#allocation6], 4294967104  ;;  %v1218_v0 = vld [vmem:[%s189_s30] sm:$0xff]  ;;  %s1051_s20 = smov 16   ;;  %s1052_s4 = smov 127   ;;  %v1055_v2 = vmov 0.0   ;;  %v224_v3 = vlaneseq }
  0x5c   : > { %243 = vrot.lane.b32.xlu1 %v1218_v0, %s1051_s20  ;;  %319 = vrot.lane.b32.xlu0 %v1218_v0, %s1052_s4  ;;  %v218_v1 = vcombine.high %v1218_v0, %v1218_v0  ;;  %s1053_s5 = smov 1   ;;  %s1054_s18 = smov 15   ;;  %v305_v10 = vld [vmem:[#allocation2 + $0x3] ss:$8 sm:$0x3]  ;;  %vm293_vm3 = vcmask 1043456   ;;  %v341_v26 = vcombine.low %v1218_v0, %v1218_v0 }
  0x5d   : > { %421 = vmatprep.mubr.f32.mxu0 %v1055_v2  ;;  %501 = vmatprep.mubr.f32.mxu1 %v1055_v2  ;;  %s1056_s7 = smov 17   ;;  %s1057_s8 = smov 112   ;;  %v232_v4 = vshrl.u32 %v224_v3, 7  ;;  %v1232_v7 = vand.u32 127, %v224_v3  ;;  %v346_v46 = vld [vmem:[#allocation7 + $0x4] sm:$0xf] }
  0x5e   : > { %s1058_s10 = smov 111   ;;  %s1059_s11 = smov 113   ;;  %v327_v11 = vld [vmem:[#allocation2 + $0x5] ss:$8 sm:$0x3]  ;;  %vm347_vm6 = vcmask 97280  }
  0x5f   : > { %v1234_v8 = vsub.s32 0, %v232_v4  ;;  %v1236_v9 = vsub.s32 1, %v232_v4  ;;  %v251_v13 = vld [vmem:[#allocation2 + $0x1] ss:$8 sm:$0x3]  ;;  %vm247_vm0 = vcmp.lt.s32.totalorder %v1232_v7, 16 }
  0x60   : > { %297 = vrot.lane.b32.xlu0 %v1218_v0, %s1053_s5  ;;  %245 = vrot.lane.b32.xlu1 %v218_v1, %s1051_s20  ;;  %vm301_vm1 = vcmp.lt.s32.totalorder %v1232_v7, 1  ;;  %vm323_vm2 = vcmp.lt.s32.totalorder %v1232_v7, 127  ;;  %v273_v15 = vld [vmem:[#allocation2 + $0x2] ss:$8 sm:$0x3]  ;;  %vm269_vm4 = vcmp.lt.s32.totalorder %v1232_v7, 15 }
  0x61   : > { %v310_v16 = vrot.slane %v305_v10, %v1234_v8  ;;  %v314_v17 = vrot.slane %v305_v10, %v1236_v9  ;;  %v332_v18 = vrot.slane %v327_v11, %v1234_v8  ;;  %v336_v19 = vrot.slane %v327_v11, %v1236_v9  ;;  %v229_v32 = vld [vmem:[#allocation2] ss:$8 sm:$0x3]  ;;  %v538_v59 = vld [vmem:[#allocation2 + $0x7] ss:$8 sm:$0x3] }
  0x62   : > { %v256_v20 = vrot.slane %v251_v13, %v1234_v8  ;;  %v260_v21 = vrot.slane %v251_v13, %v1236_v9  ;;  %v278_v25 = vrot.slane %v273_v15, %v1234_v8  ;;  %v282_v27 = vrot.slane %v273_v15, %v1236_v9  ;;  %v560_v60 = vld [vmem:[#allocation2 + $0x10] ss:$8 sm:$0x3]  ;;  %s807_s23 = sshll.u32 %s1102_s16, 7  ;;  %s215_s24 = scalar_lea.vmem [#allocation8], %s1207_s6 }
  0x63   : > { %vm226_vm5 = vcmp.lt.s32.totalorder %v1232_v7, 17  ;;  %v234_v41 = vrot.slane %v229_v32, %v1234_v8  ;;  %v238_v42 = vrot.slane %v229_v32, %v1236_v9  ;;  %vm534_vm7 = vcmp.lt.s32.totalorder %v1232_v7, 112  ;;  %s688_s22 = sshll.u32 %s215_s24, 4  ;;  %s686_s27 = scalar_lea.hbm %s1341_s3, %s807_s23  ;;  %s689_s22 = int_to_ptr.vmem [resolvable:$true] %s688_s22 }
  0x64   : > { %299 = vrot.lane.b32.xlu1 %v218_v1, %s1053_s5  ;;  %321 = vrot.lane.b32.xlu0 %v218_v1, %s1052_s4  ;;  %v543_v3 = vrot.slane %v538_v59, %v1234_v8  ;;  %vm556_vm8 = vcmp.lt.s32.totalorder %v1232_v7, 111  ;;  %v565_v4 = vrot.slane %v560_v60, %v1234_v8  ;;  %vm512_vm9 = vcmp.lt.s32.totalorder %v1232_v7, 113  ;;  %s674_s28 = scalar_lea.sflag [#allocation4], %s187_s29  ;;  %s970_s30 = scalar_lea.vmem %s689_s22, 128 }
  0x65   : > { %p971_p11 = scmp.ne.s32.totalorder %s689_s22, %s970_s30  ;;  %p1359_p2 = scmp.ne.s32.totalorder %s1351_s21, 0 }
  0x66   : > { %s1060_s20 = smov [#allocation8]  }
  0x67   : > { %p972_p6 = pnand %p971_p11, %p1359_p2  ;;  %s974_s16 = sshll.u32 %s1060_s20, 4  ;;  %s975_s16 = int_to_ptr.vmem [resolvable:$false] %s974_s16 }
  0x68   : > { %267 = vrot.lane.b32.xlu1 %v218_v1, %s1054_s18  ;;  %265 = vrot.lane.b32.xlu0 %v1218_v0, %s1054_s18  ;;  %s976_s6 = scalar_lea.vmem %s975_s16, 256  ;;  %p977_p3 = scmp.lt.s32.totalorder %s689_s22, %s975_s16 }
  0x69   : > { %p973_p12 = pneg %p972_p6  ;;  %p978_p9 = scmp.lt.s32.totalorder %s976_s6, %s970_s30 }
  0x6b   : > { %p979_p13 = por %p978_p9, %p977_p3 }
  0x6c   : > { %222 = vrot.lane.b32.xlu1 %v218_v1, %s1056_s7  ;;  %220 = vrot.lane.b32.xlu0 %v1218_v0, %s1056_s7 }
  0x6d   : > { %p980_p5 = pnand %p979_p13, %p973_p12 }
  0x70   : > { %532 = vrot.lane.b32.xlu1 %v218_v1, %s1057_s8  ;;  %530 = vrot.lane.b32.xlu0 %v1218_v0, %s1057_s8 }
  0x74   : > { %554 = vrot.lane.b32.xlu1 %v218_v1, %s1058_s10  ;;  %552 = vrot.lane.b32.xlu0 %v1218_v0, %s1058_s10 }
  0x78   : > { %510 = vrot.lane.b32.xlu1 %v218_v1, %s1059_s11  ;;  %508 = vrot.lane.b32.xlu0 %v1218_v0, %s1059_s11  ;;  %v296_v1 = vld [vmem:[#allocation7] sm:$0xf] }
  0xce   : > { %v244_v5 = vpop.permute.xlu1 %243  ;;  %v320_v6 = vpop.permute.xlu0 %319 }
  0xd2   : > { %v298_v12 = vpop.permute.xlu0 %297  ;;  %v246_v14 = vpop.permute.xlu1 %245 }
  0xd3   : > { %v249_v22 = vsel %vm247_vm0, %v246_v14, %v244_v5  ;;  %v248_v37 = vsel %vm247_vm0, %v244_v5, %v246_v14  ;;  %v569_v5 = vrot.slane %v560_v60, %v1236_v9 }
  0xd4   : > { %v263_v43 = vmul.f32 %v256_v20, %v249_v22  ;;  %v264_v47 = vmul.f32 %v260_v21, %v248_v37 }
  0xd6   : > { %v300_v23 = vpop.permute.xlu1 %299  ;;  %v322_v24 = vpop.permute.xlu0 %321  ;;  %v289_v55 = vrot.slane %v263_v43, 4  ;;  %v290_v56 = vrot.slane %v264_v47, 4 }
  0xd7   : > { %v302_v28 = vsel %vm301_vm1, %v298_v12, %v300_v23  ;;  %v303_v29 = vsel %vm301_vm1, %v300_v23, %v298_v12  ;;  %v324_v30 = vsel %vm323_vm2, %v320_v6, %v322_v24  ;;  %v325_v31 = vsel %vm323_vm2, %v322_v24, %v320_v6  ;;  %v516_v6 = vld [vmem:[#allocation2 + $0x6] ss:$8 sm:$0x3] }
  0xd8   : > { %v317_v33 = vmul.f32 %v310_v16, %v303_v29  ;;  %v318_v34 = vmul.f32 %v314_v17, %v302_v28  ;;  %v339_v35 = vmul.f32 %v332_v18, %v324_v30  ;;  %v340_v36 = vmul.f32 %v336_v19, %v325_v31  ;;  %v583_v29 = vld [vmem:[#allocation7 + $0x8] sm:$0xf] }
  0xd9   : > { %v521_v16 = vrot.slane %v516_v6, %v1234_v8  ;;  %v525_v17 = vrot.slane %v516_v6, %v1236_v9 }
  0xda   : > { %v268_v38 = vpop.permute.xlu1 %267  ;;  %792 = vmatprep.subr.msk.mxu0 %vm293_vm3, %v340_v36  ;;  %v266_v39 = vpop.permute.xlu0 %265  ;;  %v344_v40 = vsel %vm293_vm3, %v318_v34, %v1218_v0  ;;  %v343_v49 = vsel %vm293_vm3, %v317_v33, %v341_v26 }
  0xdb   : > { %v270_v44 = vsel %vm269_vm4, %v266_v39, %v268_v38  ;;  %v271_v45 = vsel %vm269_vm4, %v268_v38, %v266_v39  ;;  %793 = vmatpush1.msk.msra.mxu0 %vm293_vm3, %v339_v35 }
  0xdc   : > { %v285_v48 = vmul.f32 %v278_v25, %v271_v45  ;;  %387 = vmatprep.subr.mxu0 %v344_v40  ;;  %v286_v50 = vmul.f32 %v282_v27, %v270_v44 }
  0xdd   : > { %388 = vmatpush1.msra.mxu0 %v343_v49 }
  0xde   : > { %v223_v51 = vpop.permute.xlu1 %222  ;;  %795 = vmatprep.subr.msk.mxu1 %vm293_vm3, %v286_v50  ;;  %v221_v52 = vpop.permute.xlu0 %220  ;;  %794 = vmatmul.mubr.msk.f32.vlgmr.msra.gmra.mxu0 %vm347_vm6, %v346_v46 }
  0xdf   : > { %v227_v53 = vsel %vm226_vm5, %v221_v52, %v223_v51  ;;  %v228_v54 = vsel %vm226_vm5, %v223_v51, %v221_v52  ;;  %796 = vmatpush1.msk.msra.mxu1 %vm293_vm3, %v285_v48  ;;  %657 = vmatprep.mubr.f32.mxu0 %v1055_v2  ;;  %v547_v2 = vrot.slane %v538_v59, %v1236_v9 }
  0xe0   : > { %v241_v57 = vmul.f32 %v234_v41, %v228_v54  ;;  %v242_v58 = vmul.f32 %v238_v42, %v227_v53 }
  0xe2   : > { %v533_v61 = vpop.permute.xlu1 %532  ;;  %v531_v62 = vpop.permute.xlu0 %530  ;;  %v295_v63 = vsel %vm293_vm3, %v242_v58, %v290_v56  ;;  %v294_v0 = vsel %vm293_vm3, %v241_v57, %v289_v55 }
  0xe3   : > { %467 = vmatprep.subr.mxu1 %v295_v63  ;;  %v535_v10 = vsel %vm534_vm7, %v531_v62, %v533_v61  ;;  %v536_v11 = vsel %vm534_vm7, %v533_v61, %v531_v62 }
  0xe4   : > { %468 = vmatpush1.msra.mxu1 %v294_v0  ;;  %v550_v18 = vmul.f32 %v543_v3, %v535_v10  ;;  %v551_v19 = vmul.f32 %v547_v2, %v536_v11 }
  0xe5   : > { %797 = vmatmul.mubr.msk.f32.vlgmr.msra.gmra.mxu1 %vm347_vm6, %v296_v1 }
  0xe6   : > { %v555_v12 = vpop.permute.xlu1 %554  ;;  %v553_v13 = vpop.permute.xlu0 %552  ;;  %v576_v26 = vrot.slane %v550_v18, 4  ;;  %v577_v7 = vrot.slane %v551_v19, 4 }
  0xe7   : > { %v557_v14 = vsel %vm556_vm8, %v553_v13, %v555_v12  ;;  %v558_v15 = vsel %vm556_vm8, %v555_v12, %v553_v13 }
  0xe8   : > { %v572_v20 = vmul.f32 %v565_v4, %v557_v14  ;;  %v573_v21 = vmul.f32 %v569_v5, %v558_v15 }
  0xea   : > { %v511_v22 = vpop.permute.xlu1 %510  ;;  %798 = vmatprep.subr.msk.mxu0 %vm293_vm3, %v573_v21  ;;  %v509_v23 = vpop.permute.xlu0 %508 }
  0xeb   : > { %v513_v24 = vsel %vm512_vm9, %v509_v23, %v511_v22  ;;  %v514_v25 = vsel %vm512_vm9, %v511_v22, %v509_v23  ;;  %799 = vmatpush1.msk.msra.mxu0 %vm293_vm3, %v572_v20 }
  0xec   : > { %v528_v27 = vmul.f32 %v521_v16, %v513_v24  ;;  %v529_v28 = vmul.f32 %v525_v17, %v514_v25 }
  0xee   : > { %v581_v8 = vsel %vm293_vm3, %v529_v28, %v577_v7  ;;  %v580_v9 = vsel %vm293_vm3, %v528_v27, %v576_v26 }
  0xef   : > { %623 = vmatprep.subr.mxu0 %v581_v8 }
  0xf0   : > { %624 = vmatpush1.msra.mxu0 %v580_v9 }
  0xf1   : > { %800 = vmatmul.mubr.msk.f32.vlgmr.msra.gmra.mxu0 %vm347_vm6, %v583_v29 }
 0x19e   : > { %v423_v30 = vpop.f32.mrf.mxu0 }
 0x1a0   : > { %v425_v32 = vpop.f32.mrf.mxu0 }
 0x1a5   : > { %v503_v31 = vpop.f32.mrf.mxu1 }
 0x1a6   : > { %v504_v34 = vadd.f32 %v503_v31, %v423_v30 }
 0x1a7   : > { %v505_v33 = vpop.f32.mrf.mxu1 }
 0x1a8   : > { %v506_v36 = vadd.f32 %v505_v33, %v425_v32 }
 0x1b1   : > { %v659_v35 = vpop.f32.mrf.mxu0 }
 0x1b2   : > { %v664_v37 = vadd.f32 %v659_v35, %v504_v34 }
 0x1b3   : > { %v661_v38 = vpop.f32.mrf.mxu0 }
 0x1b4   : > { %v665_v39 = vadd.f32 %v661_v38, %v506_v36  ;;  %v666_v40 = vmax.f32 %v664_v37, 0.0 }
 0x1b6   : > { %v667_v41 = vmax.f32 %v665_v39, 0.0 }
 0x1b8   : > { %v670_v42 = vcombine.low %v666_v40, %v667_v41 }
 0x1ba   : > { %672 = vst [vmem:[%s215_s24] sm:$0xff] %v670_v42 }
 0x1bb   : > { %983 = shalt.err (!%p980_p5)
}
 0x1bc   : > { %s984_s4 = scalar_lea.hbm %s686_s27, 128  ;;  %s988_s18 = scalar_lea.hbm %s1341_s3, 256 }
 0x1bd   : > { %p985_p10 = scmp.ne.s32.totalorder %s686_s27, %s984_s4  ;;  %p989_p4 = scmp.lt.s32.totalorder %s686_s27, %s1341_s3 }
 0x1be   : > { %p990_p8 = scmp.lt.s32.totalorder %s988_s18, %s984_s4 }
 0x1bf   : > { %p986_p1 = pnand %p985_p10, %p1359_p2 }
 0x1c0   : > { %p991_p7 = por %p990_p8, %p989_p4 }
 0x1c1   : > { %p987_p0 = pneg %p986_p1 }
 0x1c3   : > { %p992_p11 = pnand %p991_p7, %p987_p0 }
 0x1c5   : > { %995 = shalt.err (!%p992_p11)
}
 0x1c6   : > { %818 = dma.vmem_to_hbm [thread:$0]  (%p1359_p2), %s689_s22, 128, %s686_s27, %s674_s28  }
 0x1c7 PF: > { %s700_s10 = sand.u32 1, %s1030_s12   ;;  %p1360_p6 = scmp.ne.s32.totalorder %s1347_s19, 0 }
 0x1c8   : > { %p1361_p12 = scmp.ge.s32.totalorder %s1042_s15, 2  ;;  %s701_s11 = scalar_lea.sflag [#allocation4], %s700_s10 }
 0x1ca   : > { %p832_p3 = pnand %p1361_p12, %p1360_p6 }
 0x1cc   : > { %p833_p9 = pneg %p832_p3 }
 0x1ce   : > { %1025 = dma.done.wait (%p833_p9), %s701_s11, 128  }
 0x1cf   : > { %1027 = vsyncadd (%p833_p9), %s701_s11, 4294967168  ;;  %p17_p13 = scmp.ge.s32.totalorder %s1153_s9, 4   ;;  %s1362_s12 = smov %s1034_s13 }
 0x1d0   : > { %s1363_s13 = smov %s1038_s14  ;;  %s1364_s14 = smov %s1162_s17 }
 0x1d1   : > { %s1365_s15 = smov %s1153_s9  ;;  %19 = sbr.rel (!%p17_p13) target bundleno = 6 (0x6), region = 95 }
 0x1d6   :  { %706 = vsyncpa [#allocation3], 1 }
 0x1d7   :  { %708 = vsyncpa [#allocation3 + $0x1], 1 }
 0x1d8   :  { %709 = vsyncpa [#allocation6], 1 }
 0x1d9   :  { %711 = vsyncpa [#allocation6 + $0x1], 1 }
 0x1da   :  { %712 = vsyncpa [#allocation4], 1 }
 0x1db   :  { %714 = vsyncpa [#allocation4 + $0x1], 1 }

</bundles_post_ra>
